<compile_context>
chip_gen: v5e
topology: v5e:2x2
jax: 0.10.0
libtpu: 0.0.40
codegen_flags: <defaults>
</compile_context>

<pallas_src>
import functools

import jax
import jax.numpy as jnp
from jax.experimental import pallas as pl
from jax.experimental.pallas import tpu as pltpu


def dqn_kernel(x_ref, w1_ref, b1_ref, w2_ref, b2_ref, w3_ref, b3_ref, o_ref):
    # ---- layer 1: tiny-K (n_obs = 3) contraction on the VPU as broadcast FMAs ----
    x = x_ref[...]                       # (TB, n_obs) f32
    w1 = w1_ref[...]                     # (n_obs, 128) f32
    h1 = b1_ref[...]                     # (1, 128) f32, broadcasts to (TB, 128)
    for k in range(x_ref.shape[1]):      # static unroll (n_obs = 3)
        h1 = h1 + x[:, k:k + 1] * w1[k:k + 1, :]
    h1 = jnp.maximum(h1, 0.0)

    # ---- layer 2: 128x128 MXU matmul, bf16 inputs, f32 accumulate ----
    h2 = jnp.dot(h1.astype(jnp.bfloat16), w2_ref[...],
                 preferred_element_type=jnp.float32)
    h2 = jnp.maximum(h2 + b2_ref[...], 0.0)

    # ---- layer 3: lane-dense (zero-padded to 128-wide) output store ----
    out = jnp.dot(h2.astype(jnp.bfloat16), w3_ref[...],
                  preferred_element_type=jnp.float32)
    o_ref[...] = (out + b3_ref[...]).astype(o_ref.dtype)


def _round_up(v, m):
    return (v + m - 1) // m * m


def init_params(key, n_observations, n_actions):
    """Deterministic PyTorch-style uniform(-1/sqrt(fan_in), 1/sqrt(fan_in)) init."""
    ks = jax.random.split(key, 6)

    def lin(kw, kb, fan_in, fan_out):
        bound = 1.0 / (fan_in ** 0.5)
        w = jax.random.uniform(kw, (fan_in, fan_out), jnp.float32, -bound, bound)
        b = jax.random.uniform(kb, (1, fan_out), jnp.float32, -bound, bound)
        return w, b

    w1, b1 = lin(ks[0], ks[1], n_observations, 128)
    w2, b2 = lin(ks[2], ks[3], 128, 128)
    w3, b3 = lin(ks[4], ks[5], 128, n_actions)
    return (w1, b1, w2, b2, w3, b3)


def prepare_params(params):
    """One-time weight preparation (hoisted out of the per-call jit).

    Cast the MXU-fed weights to bf16 and zero-pad layer 3 to a lane-dense
    128-wide output. Call once after init (or after each optimizer step),
    NOT per forward call.
    Returns (prepared_params, n_actions).
    """
    w1, b1, w2, b2, w3, b3 = params
    n_actions = w3.shape[1]
    n_pad = _round_up(n_actions, 128)
    if n_pad != n_actions:
        w3 = jnp.pad(w3, ((0, 0), (0, n_pad - n_actions)))
        b3 = jnp.pad(b3, ((0, 0), (0, n_pad - n_actions)))
    w2 = w2.astype(jnp.bfloat16)
    w3 = w3.astype(jnp.bfloat16)
    return (w1, b1, w2, b2, w3, b3), n_actions


@functools.partial(jax.jit, static_argnames=("n_actions", "tb", "out_dtype"))
def dqn_forward(x, prepared_params, n_actions, tb=1024, out_dtype=jnp.float32):
    """Forward pass. `prepared_params` must come from prepare_params()."""
    w1, b1, w2, b2, w3, b3 = prepared_params
    B, n_obs = x.shape
    hidden = w1.shape[1]                 # 128
    n_pad = w3.shape[1]                  # n_actions rounded up to 128 lanes

    # Batch tile selection:
    #  * cap at tb (=1024 by default; working set is tiny, big tiles amortize
    #    the ~0.35 us/step grid overhead),
    #  * hug B to avoid up-to-2x batch padding,
    #  * use >=2 tiles whenever B > 8 so the "parallel" grid axis gives v7x's
    #    second TensorCore work to do.
    n_tiles = pl.cdiv(B, tb)
    if B > 8 and n_tiles < 2:
        n_tiles = 2
    TB = _round_up(pl.cdiv(B, n_tiles), 8)
    B_pad = _round_up(B, TB)
    if B_pad != B:
        x = jnp.pad(x, ((0, B_pad - B), (0, 0)))

    resident = lambda i: (0, 0)          # weights/biases stay VMEM-resident
    single = pl.Buffered(1)              # constant block index -> no double-buffer

    out = pl.pallas_call(
        dqn_kernel,
        out_shape=jax.ShapeDtypeStruct((B_pad, n_pad), out_dtype),
        grid=(B_pad // TB,),
        in_specs=[
            pl.BlockSpec((TB, n_obs), lambda i: (i, 0)),                       # x
            pl.BlockSpec((n_obs, hidden), resident, pipeline_mode=single),     # w1
            pl.BlockSpec((1, hidden), resident, pipeline_mode=single),         # b1
            pl.BlockSpec((hidden, hidden), resident, pipeline_mode=single),    # w2 (bf16)
            pl.BlockSpec((1, hidden), resident, pipeline_mode=single),         # b2
            pl.BlockSpec((hidden, n_pad), resident, pipeline_mode=single),     # w3 (bf16, padded)
            pl.BlockSpec((1, n_pad), resident, pipeline_mode=single),          # b3 (padded)
        ],
        out_specs=pl.BlockSpec((TB, n_pad), lambda i: (i, 0)),
        compiler_params=pltpu.CompilerParams(
            dimension_semantics=("parallel",)),
    )(x, w1, b1, w2, b2, w3, b3)

    return out[:B, :n_actions]


if __name__ == "__main__":
    n_observations = 3
    n_actions = 8          # stand-in for len(source_lib) - 1 (not defined in-script)
    batch = 8

    key = jax.random.PRNGKey(0)
    k_params, k_x, k_x2 = jax.random.split(key, 3)
    raw_params = init_params(k_params, n_observations, n_actions)
    prepared, n_act = prepare_params(raw_params)   # one-time weight prep

    # Reference replicating the kernel's numerics (bf16 MXU inputs, f32 accum).
    w1, b1, w2, b2, w3, b3 = raw_params

    def ref_fn(xs):
        h1 = jnp.maximum(xs @ w1 + b1, 0.0)
        h2 = jnp.maximum(
            jnp.dot(h1.astype(jnp.bfloat16), w2.astype(jnp.bfloat16),
                    preferred_element_type=jnp.float32) + b2, 0.0)
        return jnp.dot(h2.astype(jnp.bfloat16), w3.astype(jnp.bfloat16),
                       preferred_element_type=jnp.float32) + b3

    # Small batch (single tile path).
    x = jax.random.normal(k_x, (batch, n_observations), jnp.float32)
    out = jax.block_until_ready(dqn_forward(x, prepared, n_actions=n_act))
    ref = ref_fn(x)
    assert out.shape == (batch, n_actions)
    assert jnp.allclose(out, ref, atol=1e-2, rtol=1e-2), \
        float(jnp.max(jnp.abs(out - ref)))

    # Ragged batch exercising the >=2-tile "parallel" grid + tight TB padding.
    batch2 = 200
    x2 = jax.random.normal(k_x2, (batch2, n_observations), jnp.float32)
    out2 = jax.block_until_ready(dqn_forward(x2, prepared, n_actions=n_act))
    ref2 = ref_fn(x2)
    assert out2.shape == (batch2, n_actions)
    assert jnp.allclose(out2, ref2, atol=1e-2, rtol=1e-2), \
        float(jnp.max(jnp.abs(out2 - ref2)))

    print("KERNEL_OK")
</pallas_src>

<mosaic_0001>
module attributes {stable_mosaic.version = 11 : i64} {
  func.func @dqn_kernel(%arg0: i32, %arg1: memref<8x3xf32, #tpu.memory_space<vmem>>, %arg2: memref<3x128xf32, #tpu.memory_space<vmem>>, %arg3: memref<1x128xf32, #tpu.memory_space<vmem>>, %arg4: memref<128x128xbf16, #tpu.memory_space<vmem>>, %arg5: memref<1x128xf32, #tpu.memory_space<vmem>>, %arg6: memref<128x128xbf16, #tpu.memory_space<vmem>>, %arg7: memref<1x128xf32, #tpu.memory_space<vmem>>, %arg8: memref<8x128xf32, #tpu.memory_space<vmem>>) attributes {dimension_semantics = [#tpu.dimension_semantics<parallel>], iteration_bounds = array<i64: 1>, scalar_prefetch = 0 : i64, scratch_operands = 0 : i64, tpu.core_type = #tpu.core_type<tc>, window_params = [{transform_indices = @transform_0, window_bounds = array<i64: 8, 3>}, {pipeline_mode = #tpu.pipeline_mode<synchronous>, transform_indices = @transform_1, window_bounds = array<i64: 3, 128>}, {pipeline_mode = #tpu.pipeline_mode<synchronous>, transform_indices = @transform_2, window_bounds = array<i64: 1, 128>}, {pipeline_mode = #tpu.pipeline_mode<synchronous>, transform_indices = @transform_3, window_bounds = array<i64: 128, 128>}, {pipeline_mode = #tpu.pipeline_mode<synchronous>, transform_indices = @transform_4, window_bounds = array<i64: 1, 128>}, {pipeline_mode = #tpu.pipeline_mode<synchronous>, transform_indices = @transform_5, window_bounds = array<i64: 128, 128>}, {pipeline_mode = #tpu.pipeline_mode<synchronous>, transform_indices = @transform_6, window_bounds = array<i64: 1, 128>}, {transform_indices = @transform_7, window_bounds = array<i64: 8, 128>}]} {
    %c0 = arith.constant 0 : index
    %c0_0 = arith.constant 0 : index
    %0 = vector.load %arg1[%c0, %c0_0] : memref<8x3xf32, #tpu.memory_space<vmem>>, vector<8x3xf32>
    %c0_1 = arith.constant 0 : index
    %c0_2 = arith.constant 0 : index
    %1 = vector.load %arg2[%c0_1, %c0_2] : memref<3x128xf32, #tpu.memory_space<vmem>>, vector<3x128xf32>
    %c0_3 = arith.constant 0 : index
    %c0_4 = arith.constant 0 : index
    %2 = vector.load %arg3[%c0_3, %c0_4] : memref<1x128xf32, #tpu.memory_space<vmem>>, vector<1x128xf32>
    %3 = vector.extract_strided_slice %0 {offsets = [0, 0], sizes = [8, 1], strides = [1, 1]} : vector<8x3xf32> to vector<8x1xf32>
    %4 = vector.extract_strided_slice %1 {offsets = [0, 0], sizes = [1, 128], strides = [1, 1]} : vector<3x128xf32> to vector<1x128xf32>
    %5 = vector.broadcast %3 : vector<8x1xf32> to vector<8x128xf32>
    %6 = vector.broadcast %4 : vector<1x128xf32> to vector<8x128xf32>
    %7 = arith.mulf %5, %6 : vector<8x128xf32>
    %8 = vector.broadcast %2 : vector<1x128xf32> to vector<8x128xf32>
    %9 = arith.addf %8, %7 : vector<8x128xf32>
    %10 = vector.extract_strided_slice %0 {offsets = [0, 1], sizes = [8, 1], strides = [1, 1]} : vector<8x3xf32> to vector<8x1xf32>
    %11 = vector.extract_strided_slice %1 {offsets = [1, 0], sizes = [1, 128], strides = [1, 1]} : vector<3x128xf32> to vector<1x128xf32>
    %12 = vector.broadcast %10 : vector<8x1xf32> to vector<8x128xf32>
    %13 = vector.broadcast %11 : vector<1x128xf32> to vector<8x128xf32>
    %14 = arith.mulf %12, %13 : vector<8x128xf32>
    %15 = arith.addf %9, %14 : vector<8x128xf32>
    %16 = vector.extract_strided_slice %0 {offsets = [0, 2], sizes = [8, 1], strides = [1, 1]} : vector<8x3xf32> to vector<8x1xf32>
    %17 = vector.extract_strided_slice %1 {offsets = [2, 0], sizes = [1, 128], strides = [1, 1]} : vector<3x128xf32> to vector<1x128xf32>
    %18 = vector.broadcast %16 : vector<8x1xf32> to vector<8x128xf32>
    %19 = vector.broadcast %17 : vector<1x128xf32> to vector<8x128xf32>
    %20 = arith.mulf %18, %19 : vector<8x128xf32>
    %21 = arith.addf %15, %20 : vector<8x128xf32>
    %cst = arith.constant 0.000000e+00 : f32
    %22 = vector.broadcast %cst : f32 to vector<8x128xf32>
    %23 = arith.maximumf %21, %22 : vector<8x128xf32>
    %24 = arith.truncf %23 : vector<8x128xf32> to vector<8x128xbf16>
    %c0_5 = arith.constant 0 : index
    %c0_6 = arith.constant 0 : index
    %25 = vector.load %arg4[%c0_5, %c0_6] : memref<128x128xbf16, #tpu.memory_space<vmem>>, vector<128x128xbf16>
    %cst_7 = arith.constant dense<0.000000e+00> : vector<8x128xf32>
    %26 = tpu.matmul %24, %25, %cst_7 {dimension_numbers = #tpu.dot_dimension_numbers<[1], [0], [0], [1], [0, 0, 1, 1], [], []>} : vector<8x128xbf16>, vector<128x128xbf16>, vector<8x128xf32> -> vector<8x128xf32>
    %c0_8 = arith.constant 0 : index
    %c0_9 = arith.constant 0 : index
    %27 = vector.load %arg5[%c0_8, %c0_9] : memref<1x128xf32, #tpu.memory_space<vmem>>, vector<1x128xf32>
    %28 = vector.broadcast %27 : vector<1x128xf32> to vector<8x128xf32>
    %29 = arith.addf %26, %28 : vector<8x128xf32>
    %cst_10 = arith.constant 0.000000e+00 : f32
    %30 = vector.broadcast %cst_10 : f32 to vector<8x128xf32>
    %31 = arith.maximumf %29, %30 : vector<8x128xf32>
    %32 = arith.truncf %31 : vector<8x128xf32> to vector<8x128xbf16>
    %c0_11 = arith.constant 0 : index
    %c0_12 = arith.constant 0 : index
    %33 = vector.load %arg6[%c0_11, %c0_12] : memref<128x128xbf16, #tpu.memory_space<vmem>>, vector<128x128xbf16>
    %cst_13 = arith.constant dense<0.000000e+00> : vector<8x128xf32>
    %34 = tpu.matmul %32, %33, %cst_13 {dimension_numbers = #tpu.dot_dimension_numbers<[1], [0], [0], [1], [0, 0, 1, 1], [], []>} : vector<8x128xbf16>, vector<128x128xbf16>, vector<8x128xf32> -> vector<8x128xf32>
    %c0_14 = arith.constant 0 : index
    %c0_15 = arith.constant 0 : index
    %35 = vector.load %arg7[%c0_14, %c0_15] : memref<1x128xf32, #tpu.memory_space<vmem>>, vector<1x128xf32>
    %36 = vector.broadcast %35 : vector<1x128xf32> to vector<8x128xf32>
    %37 = arith.addf %34, %36 : vector<8x128xf32>
    %c0_16 = arith.constant 0 : index
    %c0_17 = arith.constant 0 : index
    %38 = vector.load %arg8[%c0_16, %c0_17] : memref<8x128xf32, #tpu.memory_space<vmem>>, vector<8x128xf32>
    tpu.vector_store %arg8[%c0_16, %c0_17], %37 {strides = array<i32>} : memref<8x128xf32, #tpu.memory_space<vmem>>, vector<8x128xf32>,
    return
  }
  func.func @transform_0(%arg0: i32) -> (i32, i32) {
    %c0_i32 = arith.constant 0 : i32
    %c0_i32_0 = arith.constant 0 : i32
    return %arg0, %c0_i32 : i32, i32
  }
  func.func @transform_1(%arg0: i32) -> (i32, i32) {
    %c0_i32 = arith.constant 0 : i32
    %c0_i32_0 = arith.constant 0 : i32
    %c0_i32_1 = arith.constant 0 : i32
    return %c0_i32, %c0_i32_0 : i32, i32
  }
  func.func @transform_2(%arg0: i32) -> (i32, i32) {
    %c0_i32 = arith.constant 0 : i32
    %c0_i32_0 = arith.constant 0 : i32
    %c0_i32_1 = arith.constant 0 : i32
    return %c0_i32, %c0_i32_0 : i32, i32
  }
  func.func @transform_3(%arg0: i32) -> (i32, i32) {
    %c0_i32 = arith.constant 0 : i32
    %c0_i32_0 = arith.constant 0 : i32
    %c0_i32_1 = arith.constant 0 : i32
    return %c0_i32, %c0_i32_0 : i32, i32
  }
  func.func @transform_4(%arg0: i32) -> (i32, i32) {
    %c0_i32 = arith.constant 0 : i32
    %c0_i32_0 = arith.constant 0 : i32
    %c0_i32_1 = arith.constant 0 : i32
    return %c0_i32, %c0_i32_0 : i32, i32
  }
  func.func @transform_5(%arg0: i32) -> (i32, i32) {
    %c0_i32 = arith.constant 0 : i32
    %c0_i32_0 = arith.constant 0 : i32
    %c0_i32_1 = arith.constant 0 : i32
    return %c0_i32, %c0_i32_0 : i32, i32
  }
  func.func @transform_6(%arg0: i32) -> (i32, i32) {
    %c0_i32 = arith.constant 0 : i32
    %c0_i32_0 = arith.constant 0 : i32
    %c0_i32_1 = arith.constant 0 : i32
    return %c0_i32, %c0_i32_0 : i32, i32
  }
  func.func @transform_7(%arg0: i32) -> (i32, i32) {
    %c0_i32 = arith.constant 0 : i32
    %c0_i32_0 = arith.constant 0 : i32
    return %arg0, %c0_i32 : i32, i32
  }
}

</mosaic_0001>

<bundles_post_ra>
// kernel: dqn_forward.1
= control target key start
LH: loop header
LB: loop body
LE: loop exit
PB: predicated region body
PF: predicated region fallthrough
CT: control target
= control target key end

     0   :  { %12 = vsyncpa [#allocation3], 0  ;;  %s517_s0 = inlined_call_operand.vmem [shape: f32[8,3], index: 0, kind: input, shape index: {}]   ;;  %s518_s1 = inlined_call_operand.vmem [shape: f32[3,128], index: 1, kind: input, shape index: {}]   ;;  %s519_s2 = inlined_call_operand.vmem [shape: f32[1,128], index: 2, kind: input, shape index: {}]   ;;  %s520_s3 = inlined_call_operand.hbm [shape: bf16[128,128], index: 3, kind: input, shape index: {}]   ;;  %s521_s4 = inlined_call_operand.vmem [shape: f32[1,128], index: 4, kind: input, shape index: {}]   ;;  %s522_s5 = inlined_call_operand.hbm [shape: bf16[128,128], index: 5, kind: input, shape index: {}]   ;;  %s523_s6 = inlined_call_operand.vmem [shape: f32[1,128], index: 6, kind: input, shape index: {}]   ;;  %s524_s7 = inlined_call_operand.hbm [shape: f32[8,128], index: 7, kind: output, shape index: {}]  }
   0x1   :  { %13 = vsyncpa [#allocation6], 0 }
   0x2   :  { %14 = vsyncpa [#allocation4], 0  ;;  %s25_s26 = sshll.u32 %s520_s3, 4  ;;  %s445_s27 = smov [#allocation2]   ;;  %s26_s26 = int_to_ptr.hbm [resolvable:$true] %s25_s26 }
   0x3   :  { %s27_s28 = sshll.u32 %s445_s27, 4  ;;  %s40_s8 = sshll.u32 %s522_s5, 4  ;;  %s28_s28 = int_to_ptr.vmem [resolvable:$true] %s27_s28  ;;  %s41_s8 = int_to_ptr.hbm [resolvable:$true] %s40_s8 }
   0x4   :  { %s446_s9 = smov 64   ;;  %s447_s10 = smov 4  }
   0x5   :  { %33 = dma.hbm_to_vmem [thread:$0]  %s26_s26, 1024, %s28_s28, [#allocation3], %s446_s9, %s446_s9, %s447_s10  }
   0x6   :  { %s448_s11 = smov [#allocation5]  }
   0x7   :  { %s42_s12 = sshll.u32 %s448_s11, 4  ;;  %s43_s12 = int_to_ptr.vmem [resolvable:$true] %s42_s12 }
   0x8   :  { %48 = dma.hbm_to_vmem [thread:$0]  %s41_s8, 1024, %s43_s12, [#allocation6], %s446_s9, %s446_s9, %s447_s10  }
   0x9   :  { %439 = dma.done.wait [#allocation3], 1024  }
   0xa   :  { %440 = vsyncadd [#allocation3], 4294966272 }
   0xb   :  { %441 = dma.done.wait [#allocation6], 1024  }
   0xc   :  { %442 = vsyncadd [#allocation6], 4294966272  ;;  %v449_v0 = vmov 0   ;;  %v450_v1 = vmov 2   ;;  %v59_v2 = vld [vmem:[%s517_s0] sm:$0xff]  ;;  %v343_v3 = vld [vmem:[#allocation2 + $0x38] sm:$0xff] }
   0xd   :  { %360 = vset.pattern.permute.xlu0 %v449_v0  ;;  %362 = vset.pattern.permute.xlu1 %v450_v1  ;;  %v342_v4 = vld [vmem:[#allocation2 + $0x30] sm:$0xff]  ;;  %v341_v5 = vld [vmem:[#allocation2 + $0x28] sm:$0xff]  ;;  %v451_v6 = vmov 1   ;;  %v340_v7 = vld [vmem:[#allocation2 + $0x20] sm:$0xff]  ;;  %s452_s18 = smov [#allocation7]   ;;  %s261_s22 = sshll.u32 %s524_s7, 4  ;;  %s262_s22 = int_to_ptr.hbm [resolvable:$true] %s261_s22 }
   0xe   :  { %64 = vperm.xlu0 %360, %v59_v2   ;;  %81 = vperm.xlu1 %362, %v59_v2   ;;  %v339_v8 = vld [vmem:[#allocation2 + $0x18] sm:$0xff]  ;;  %v338_v9 = vld [vmem:[#allocation2 + $0x10] sm:$0xff]  ;;  %v337_v10 = vld [vmem:[#allocation2 + $0x8] sm:$0xff]  ;;  %s259_s19 = sshll.u32 %s452_s18, 4  ;;  %s260_s19 = int_to_ptr.vmem [resolvable:$true] %s259_s19 }
   0xf   :  { %157 = vmatpush.bf16.msra.mxu0 %v343_v3  ;;  %v336_v11 = vld [vmem:[#allocation2] sm:$0xff]  ;;  %v351_v12 = vld [vmem:[#allocation5 + $0x38] sm:$0xff]  ;;  %v350_v13 = vld [vmem:[#allocation5 + $0x30] sm:$0xff] }
  0x10   :  { %240 = vmatpush.bf16.msra.mxu1 %v351_v12  ;;  %v349_v14 = vld [vmem:[#allocation5 + $0x28] sm:$0xff]  ;;  %v348_v15 = vld [vmem:[#allocation5 + $0x20] sm:$0xff]  ;;  %v347_v19 = vld [vmem:[#allocation5 + $0x18] sm:$0xff] }
  0x11   :  { %v60_v16 = vld [vmem:[%s518_s1] sm:$0x7]  ;;  %v346_v24 = vld [vmem:[#allocation5 + $0x10] sm:$0xff]  ;;  %v345_v34 = vld [vmem:[#allocation5 + $0x8] sm:$0xff] }
  0x12   :  { %v67_v18 = vperm.slane %v60_v16, 0  ;;  %v364_v20 = vld [vmem:[%s519_s2] ss:$0 sm:$0xff]  ;;  %v77_v22 = vperm.slane %v60_v16, 1  ;;  %v84_v23 = vperm.slane %v60_v16, 2 }
  0x13   :  { %158 = vmatpush.bf16.msra.mxu0 %v342_v4  ;;  %v344_v35 = vld [vmem:[#allocation5] sm:$0xff] }
  0x14   :  { %241 = vmatpush.bf16.msra.mxu1 %v350_v13  ;;  %v365_v36 = vld [vmem:[%s521_s4] ss:$0 sm:$0xff] }
  0x15   :  { %v366_v42 = vld [vmem:[%s523_s6] ss:$0 sm:$0xff] }
  0x16   :  { %361 = vset.pattern.permute.xlu0 %v451_v6 }
  0x17   :  { %74 = vperm.xlu0 %361, %v59_v2   ;;  %159 = vmatpush.bf16.msra.mxu0 %v341_v5 }
  0x18   :  { %242 = vmatpush.bf16.msra.mxu1 %v349_v14 }
  0x1b   :  { %160 = vmatpush.bf16.msra.mxu0 %v340_v7 }
  0x1c   :  { %243 = vmatpush.bf16.msra.mxu1 %v348_v15 }
  0x1f   :  { %363 = vset.pattern.permute.xlu0 %v450_v1  ;;  %161 = vmatpush.bf16.msra.mxu0 %v339_v8 }
  0x20   :  { %244 = vmatpush.bf16.msra.mxu1 %v347_v19 }
  0x23   :  { %162 = vmatpush.bf16.msra.mxu0 %v338_v9 }
  0x24   :  { %245 = vmatpush.bf16.msra.mxu1 %v346_v24 }
  0x27   :  { %163 = vmatpush.bf16.msra.mxu0 %v337_v10 }
  0x28   :  { %246 = vmatpush.bf16.msra.mxu1 %v345_v34 }
  0x2b   :  { %164 = vmatpush.bf16.msra.mxu0 %v336_v11 }
  0x2c   :  { %247 = vmatpush.bf16.msra.mxu1 %v344_v35 }
  0x80   :  { %v65_v17 = vpop.permute.xlu0 %64  ;;  %v82_v25 = vpop.permute.xlu1 %81 }
  0x81   :  { %v68_v21 = vmul.f32 %v67_v18, %v65_v17  ;;  %v85_v29 = vmul.f32 %v84_v23, %v82_v25 }
  0x83   :  { %v72_v27 = vadd.f32 %v364_v20, %v68_v21 }
  0x89   :  { %v75_v26 = vpop.permute.xlu0 %74 }
  0x8a   :  { %v78_v28 = vmul.f32 %v77_v22, %v75_v26 }
  0x8c   :  { %v79_v30 = vadd.f32 %v78_v28, %v72_v27 }
  0x8e   :  { %v86_v31 = vadd.f32 %v85_v29, %v79_v30 }
  0x90   :  { %v87_v32 = vmax.f32 %v86_v31, 0.0 }
  0x92   :  { %v88_v33 = vpack.c.bf16 %v87_v32, %v87_v32 }
  0x94   :  { %165 = vmatmul.bf16.vlgmr.msra.gmra.mxu0 %v88_v33 }
 0x111   :  { %v166_v37 = vpop.f32.mrf.mxu0 }
 0x112   :  { %v167_v38 = vadd.f32 %v365_v36, %v166_v37 }
 0x114   :  { %v170_v39 = vmax.f32 %v167_v38, 0.0 }
 0x116   :  { %v171_v40 = vpack.c.bf16 %v170_v39, %v170_v39 }
 0x118   :  { %248 = vmatmul.bf16.vlgmr.msra.gmra.mxu1 %v171_v40 }
 0x119   :  { %v168_v41 = vpop.f32.mrf.mxu0 }
 0x195   :  { %v249_v43 = vpop.f32.mrf.mxu1 }
 0x196   :  { %v250_v44 = vadd.f32 %v366_v42, %v249_v43 }
 0x198   :  { %253 = vst [vmem:[#allocation7] sm:$0xff] %v250_v44 }
 0x199   :  { %264 = dma.vmem_to_hbm [thread:$0]  %s260_s19, 128, %s262_s22, [#allocation4]  }
 0x19d   :  { %v251_v45 = vpop.f32.mrf.mxu1 }
 0x19e   :  { %443 = dma.done.wait [#allocation4], 128  }
 0x19f   :  { %444 = vsyncadd [#allocation4], 4294967168 }
 0x1a0   :  { %269 = vsyncpa [#allocation3], 1 }
 0x1a1   :  { %270 = vsyncpa [#allocation6], 1 }
 0x1a2   :  { %271 = vsyncpa [#allocation4], 1 }

</bundles_post_ra>
